<compile_context>
chip_gen: v7x
topology: tpu7x:2x2x1
jax: 0.10.0
libtpu: 0.0.40
codegen_flags: <defaults>
</compile_context>

<pallas_src>
import jax
import jax.numpy as jnp
from jax.experimental import pallas as pl
from jax.experimental.pallas import tpu as pltpu


def _round_up(x, m):
    return ((x + m - 1) // m) * m


def _default_block_n(n_pad):
    """128-wide output slabs on v5e, 256-wide on v6e/v7x when divisible."""
    try:
        kind = jax.devices()[0].device_kind.lower()
    except Exception:  # pragma: no cover - defensive
        kind = ""
    is_v5e = ("v5 lite" in kind) or ("v5e" in kind) or ("v5lite" in kind)
    if (not is_v5e) and (n_pad % 256 == 0):
        return 256
    return 128


def _fc_bn_relu_kernel(x_ref, w_ref, scale_ref, shift_ref, o_ref):
    # x_ref:     (block_b, K_pad)    VMEM (compute dtype, e.g. bf16)
    # w_ref:     (K_pad, block_n)    VMEM (plain W.T column slab, compute dtype)
    # scale_ref: (1, block_n)        VMEM f32  (gamma * rsqrt(var+eps))
    # shift_ref: (1, block_n)        VMEM f32  ((b - mean) * scale + beta)
    # o_ref:     (block_b, block_n)  VMEM
    y = jnp.dot(x_ref[...], w_ref[...], preferred_element_type=jnp.float32)
    y = y * scale_ref[...] + shift_ref[...]                 # fused bias + BatchNorm1d
    o_ref[...] = jnp.maximum(y, 0.0).astype(o_ref.dtype)    # ReLU (dropout = id, eval)


def prepare_fc_block_params(w, b, gamma, beta, running_mean, running_var, *,
                            eps=1e-5, compute_dtype=jnp.bfloat16, block_n=None):
    """One-time (model-load) preparation: transpose/pad/cast W, fold BN into
    per-column f32 scale/shift.  w: (planes, inplanes) in nn.Linear layout."""
    planes, inplanes = w.shape
    K_pad = _round_up(inplanes, 128)
    if block_n is None:
        block_n = _default_block_n(_round_up(planes, 128))
    N_pad = _round_up(planes, block_n)

    scale = (gamma * jax.lax.rsqrt(running_var + eps)).astype(jnp.float32)
    shift = ((b - running_mean) * scale + beta).astype(jnp.float32)

    wT = jnp.transpose(w).astype(compute_dtype)               # (inplanes, planes)
    if (K_pad != inplanes) or (N_pad != planes):
        wT = jnp.pad(wT, ((0, K_pad - inplanes), (0, N_pad - planes)))
    scale_p = jnp.pad(scale, (0, N_pad - planes)).reshape(1, N_pad)
    shift_p = jnp.pad(shift, (0, N_pad - planes)).reshape(1, N_pad)

    return dict(wT=wT, scale=scale_p, shift=shift_p,
                inplanes=inplanes, planes=planes,
                K_pad=K_pad, N_pad=N_pad, block_n=block_n,
                compute_dtype=compute_dtype)


def fc_block_forward(x, params, *, out_dtype=jnp.float32, max_block_b=256):
    """x: (B, inplanes) -> (B, planes). `params` from prepare_fc_block_params."""
    B, inplanes = x.shape
    assert inplanes == params["inplanes"], "inplanes mismatch with prepared params"
    K_pad = params["K_pad"]
    N_pad = params["N_pad"]
    block_n = params["block_n"]
    planes = params["planes"]
    compute_dtype = params["compute_dtype"]

    # Batch tile: only sublane-align small batches; for large batches pick the
    # tile from {128, 256} that minimizes padding.
    sub = 16 if jnp.dtype(compute_dtype).itemsize == 2 else 8
    b_sub = _round_up(B, sub)
    if b_sub <= max_block_b:
        block_b = b_sub
    else:
        cands = sorted({c for c in (128, 256, max_block_b) if c <= max_block_b})
        block_b = min(cands, key=lambda c: (_round_up(B, c), c))
    B_pad = _round_up(B, block_b)

    x_c = x.astype(compute_dtype)
    if (B_pad != B) or (K_pad != inplanes):
        x_c = jnp.pad(x_c, ((0, B_pad - B), (0, K_pad - inplanes)))

    # Weight-slab axis OUTER, batch axis INNER: each W column slab is DMA'd
    # once; only the (small) x tile re-streams across batch tiles.
    grid = (N_pad // block_n, B_pad // block_b)

    cdt_bytes = jnp.dtype(compute_dtype).itemsize
    flops = 2 * B * inplanes * planes                       # unpadded
    bytes_accessed = (B * inplanes * cdt_bytes
                      + inplanes * planes * cdt_bytes
                      + 2 * planes * 4
                      + B * planes * jnp.dtype(out_dtype).itemsize)

    out = pl.pallas_call(
        _fc_bn_relu_kernel,
        out_shape=jax.ShapeDtypeStruct((B_pad, N_pad), out_dtype),
        grid_spec=pltpu.PrefetchScalarGridSpec(
            num_scalar_prefetch=0,
            grid=grid,
            in_specs=[
                # x: new batch tile each inner step, full K per step.
                pl.BlockSpec((block_b, K_pad), lambda j, i: (i, 0)),
                # W^T column slab: constant across the inner (batch) axis.
                pl.BlockSpec((K_pad, block_n), lambda j, i: (0, j)),
                pl.BlockSpec((1, block_n), lambda j, i: (0, j)),
                pl.BlockSpec((1, block_n), lambda j, i: (0, j)),
            ],
            out_specs=pl.BlockSpec((block_b, block_n), lambda j, i: (i, j)),
        ),
        compiler_params=pltpu.CompilerParams(
            dimension_semantics=("parallel", "parallel")),
        cost_estimate=pl.CostEstimate(
            flops=flops, transcendentals=0, bytes_accessed=bytes_accessed),
    )(x_c, params["wT"], params["scale"], params["shift"])

    if (B_pad != B) or (N_pad != planes):
        out = out[:B, :planes]
    return out


def _reference(x, w, b, gamma, beta, running_mean, running_var, eps=1e-5):
    y = x @ w.T + b
    y = (y - running_mean) / jnp.sqrt(running_var + eps) * gamma + beta
    return jnp.maximum(y, 0.0)


if __name__ == "__main__":
    key = jax.random.PRNGKey(0)
    kx, kw, kb, kx2, kw2, kb2 = jax.random.split(key, 6)

    # ---- ResNet18/34 stem fc_block shapes: 512*expansion(=1) -> 256, B=32 ----
    B, inplanes, planes = 32, 512, 256
    x = jax.random.normal(kx, (B, inplanes), dtype=jnp.float32)
    bound = 1.0 / jnp.sqrt(jnp.float32(inplanes))
    w = jax.random.uniform(kw, (planes, inplanes), jnp.float32, -bound, bound)
    b = jax.random.uniform(kb, (planes,), jnp.float32, -bound, bound)
    gamma = jnp.ones((planes,), jnp.float32)
    beta = jnp.zeros((planes,), jnp.float32)
    running_mean = jnp.zeros((planes,), jnp.float32)
    running_var = jnp.ones((planes,), jnp.float32)

    ref = _reference(x, w, b, gamma, beta, running_mean, running_var)

    # 1) f32 compute path: tight numeric check (aligned shapes -> no pads/slices).
    p_f32 = prepare_fc_block_params(w, b, gamma, beta, running_mean, running_var,
                                    compute_dtype=jnp.float32)
    out_f32 = jax.block_until_ready(fc_block_forward(x, p_f32,
                                                     out_dtype=jnp.float32))
    assert out_f32.shape == (B, planes)
    assert jnp.allclose(out_f32, ref, atol=1e-4, rtol=1e-4), "f32 mismatch vs reference"

    # 2) Perf configuration: bf16 operands, f32 epilogue, bf16 output.
    p_bf16 = prepare_fc_block_params(w, b, gamma, beta, running_mean, running_var,
                                     compute_dtype=jnp.bfloat16)
    out_bf16 = jax.block_until_ready(fc_block_forward(x, p_bf16,
                                                      out_dtype=jnp.bfloat16))
    assert out_bf16.shape == (B, planes)
    assert jnp.allclose(out_bf16.astype(jnp.float32), ref, atol=8e-2, rtol=8e-2), \
        "bf16 mismatch vs reference"

    # 3) Unaligned shapes: exercise the pad/slice path (e.g. head-like dims).
    B2, in2, pl2 = 10, 200, 72
    x2 = jax.random.normal(kx2, (B2, in2), dtype=jnp.float32)
    bound2 = 1.0 / jnp.sqrt(jnp.float32(in2))
    w2 = jax.random.uniform(kw2, (pl2, in2), jnp.float32, -bound2, bound2)
    b2 = jax.random.uniform(kb2, (pl2,), jnp.float32, -bound2, bound2)
    g2 = jnp.ones((pl2,), jnp.float32); be2 = jnp.zeros((pl2,), jnp.float32)
    m2 = jnp.zeros((pl2,), jnp.float32); v2 = jnp.ones((pl2,), jnp.float32)
    ref2 = _reference(x2, w2, b2, g2, be2, m2, v2)
    p2 = prepare_fc_block_params(w2, b2, g2, be2, m2, v2,
                                 compute_dtype=jnp.float32)
    out2 = jax.block_until_ready(fc_block_forward(x2, p2, out_dtype=jnp.float32))
    assert out2.shape == (B2, pl2)
    assert jnp.allclose(out2, ref2, atol=1e-4, rtol=1e-4), "padded-path mismatch"

    print("KERNEL_OK")
</pallas_src>

<mosaic_0001>
module attributes {stable_mosaic.version = 11 : i64} {
  func.func @_fc_bn_relu_kernel(%arg0: i32, %arg1: i32, %arg2: memref<32x512xf32, #tpu.memory_space<vmem>>, %arg3: memref<512x256xf32, #tpu.memory_space<vmem>>, %arg4: memref<1x256xf32, #tpu.memory_space<vmem>>, %arg5: memref<1x256xf32, #tpu.memory_space<vmem>>, %arg6: memref<32x256xf32, #tpu.memory_space<vmem>>) attributes {dimension_semantics = [#tpu.dimension_semantics<parallel>, #tpu.dimension_semantics<parallel>], iteration_bounds = array<i64: 1, 1>, scalar_prefetch = 0 : i64, scratch_operands = 0 : i64, tpu.core_type = #tpu.core_type<tc>, window_params = [{transform_indices = @transform_0, window_bounds = array<i64: 32, 512>}, {transform_indices = @transform_1, window_bounds = array<i64: 512, 256>}, {transform_indices = @transform_2, window_bounds = array<i64: 1, 256>}, {transform_indices = @transform_3, window_bounds = array<i64: 1, 256>}, {transform_indices = @transform_4, window_bounds = array<i64: 32, 256>}]} {
    %c0 = arith.constant 0 : index
    %c0_0 = arith.constant 0 : index
    %0 = vector.load %arg2[%c0, %c0_0] : memref<32x512xf32, #tpu.memory_space<vmem>>, vector<32x512xf32>
    %c0_1 = arith.constant 0 : index
    %c0_2 = arith.constant 0 : index
    %1 = vector.load %arg3[%c0_1, %c0_2] : memref<512x256xf32, #tpu.memory_space<vmem>>, vector<512x256xf32>
    %cst = arith.constant dense<0.000000e+00> : vector<32x256xf32>
    %2 = tpu.matmul %0, %1, %cst {dimension_numbers = #tpu.dot_dimension_numbers<[1], [0], [0], [1], [0, 0, 1, 1], [], []>} : vector<32x512xf32>, vector<512x256xf32>, vector<32x256xf32> -> vector<32x256xf32>
    %c0_3 = arith.constant 0 : index
    %c0_4 = arith.constant 0 : index
    %3 = vector.load %arg4[%c0_3, %c0_4] : memref<1x256xf32, #tpu.memory_space<vmem>>, vector<1x256xf32>
    %4 = vector.broadcast %3 : vector<1x256xf32> to vector<32x256xf32>
    %5 = arith.mulf %2, %4 : vector<32x256xf32>
    %c0_5 = arith.constant 0 : index
    %c0_6 = arith.constant 0 : index
    %6 = vector.load %arg5[%c0_5, %c0_6] : memref<1x256xf32, #tpu.memory_space<vmem>>, vector<1x256xf32>
    %7 = vector.broadcast %6 : vector<1x256xf32> to vector<32x256xf32>
    %8 = arith.addf %5, %7 : vector<32x256xf32>
    %cst_7 = arith.constant 0.000000e+00 : f32
    %9 = vector.broadcast %cst_7 : f32 to vector<32x256xf32>
    %10 = arith.maximumf %8, %9 : vector<32x256xf32>
    %c0_8 = arith.constant 0 : index
    %c0_9 = arith.constant 0 : index
    %11 = vector.load %arg6[%c0_8, %c0_9] : memref<32x256xf32, #tpu.memory_space<vmem>>, vector<32x256xf32>
    tpu.vector_store %arg6[%c0_8, %c0_9], %10 {strides = array<i32>} : memref<32x256xf32, #tpu.memory_space<vmem>>, vector<32x256xf32>,
    return
  }
  func.func @transform_0(%arg0: i32, %arg1: i32) -> (i32, i32) {
    %c0_i32 = arith.constant 0 : i32
    %c0_i32_0 = arith.constant 0 : i32
    return %arg1, %c0_i32 : i32, i32
  }
  func.func @transform_1(%arg0: i32, %arg1: i32) -> (i32, i32) {
    %c0_i32 = arith.constant 0 : i32
    %c0_i32_0 = arith.constant 0 : i32
    return %c0_i32, %arg0 : i32, i32
  }
  func.func @transform_2(%arg0: i32, %arg1: i32) -> (i32, i32) {
    %c0_i32 = arith.constant 0 : i32
    %c0_i32_0 = arith.constant 0 : i32
    return %c0_i32, %arg0 : i32, i32
  }
  func.func @transform_3(%arg0: i32, %arg1: i32) -> (i32, i32) {
    %c0_i32 = arith.constant 0 : i32
    %c0_i32_0 = arith.constant 0 : i32
    return %c0_i32, %arg0 : i32, i32
  }
  func.func @transform_4(%arg0: i32, %arg1: i32) -> (i32, i32) {
    %c0_i32 = arith.constant 0 : i32
    return %arg1, %arg0 : i32, i32
  }
}

</mosaic_0001>

<bundles_post_ra>
// kernel: tpu_custom_call.1
= control target key start
LH: loop header
LB: loop body
LE: loop exit
PB: predicated region body
PF: predicated region fallthrough
CT: control target
= control target key end

     0   :  { %9 = vsyncpa [#allocation3], 0  ;;  %s737_s0 = inlined_call_operand.hbm [shape: f32[32,512], index: 0, kind: input, shape index: {}]   ;;  %s738_s1 = inlined_call_operand.hbm [shape: f32[512,256], index: 1, kind: input, shape index: {}]   ;;  %s739_s2 = inlined_call_operand.vmem [shape: f32[1,256], index: 2, kind: input, shape index: {}]   ;;  %s740_s3 = inlined_call_operand.vmem [shape: f32[1,256], index: 3, kind: input, shape index: {}]   ;;  %s741_s4 = inlined_call_operand.hbm [shape: f32[32,256], index: 4, kind: output, shape index: {}]  }
   0x1   :  { %10 = vsyncpa [#allocation6], 0 }
   0x2   :  { %11 = vsyncpa [#allocation4], 0  ;;  %s657_s15 = smov [#allocation2]   ;;  %s585_s19 = scalar_lea.hbm %s737_s0, 2048 }
   0x3   :  { %s17_s16 = sshll.u32 %s657_s15, 4  ;;  %p586_p0 = scmp.ne.s32.totalorder %s737_s0, %s585_s19  ;;  %s18_s16 = int_to_ptr.vmem [resolvable:$true] %s17_s16 }
   0x4   :  { %p589_p1 = scmp.lt.u32.totalorder %s585_s19, %s737_s0 }
   0x6   :  { %p591_p2 = pnand %p589_p1, %p586_p0 }
   0x8   :  { %594 = shalt.err (!%p591_p2)
}
   0x9   :  { %s595_s24 = scalar_lea.vmem %s18_s16, 2048  ;;  %p600_p4 = scmp.lt.s32.totalorder %s18_s16, %s18_s16 }
   0xa   :  { %p596_p3 = scmp.ne.s32.totalorder %s18_s16, %s595_s24  ;;  %p601_p5 = scmp.lt.s32.totalorder %s595_s24, %s595_s24 }
   0xc   :  { %p602_p6 = por %p601_p5, %p600_p4 }
   0xe   :  { %p603_p7 = pnand %p602_p6, %p596_p3 }
  0x10   :  { %606 = shalt.err (!%p603_p7)
}
  0x11   :  { %s658_s25 = smov 512   ;;  %s659_s26 = smov 32  }
  0x12   :  { %23 = dma.hbm_to_vmem [thread:$0]  %s737_s0, 2048, %s18_s16, [#allocation3], %s658_s25, %s658_s25, %s659_s26  }
  0x13   :  { %s660_s29 = smov [#allocation5]   ;;  %s607_s7 = scalar_lea.hbm %s738_s1, 16384 }
  0x14   :  { %s29_s30 = sshll.u32 %s660_s29, 4  ;;  %p608_p8 = scmp.ne.s32.totalorder %s738_s1, %s607_s7  ;;  %s30_s30 = int_to_ptr.vmem [resolvable:$true] %s29_s30 }
  0x15   :  { %p611_p9 = scmp.lt.u32.totalorder %s607_s7, %s738_s1 }
  0x17   :  { %p613_p10 = pnand %p611_p9, %p608_p8 }
  0x19   :  { %616 = shalt.err (!%p613_p10)
}
  0x1a   :  { %s617_s12 = scalar_lea.vmem %s30_s30, 16384  ;;  %p622_p12 = scmp.lt.s32.totalorder %s30_s30, %s30_s30 }
  0x1b   :  { %p618_p11 = scmp.ne.s32.totalorder %s30_s30, %s617_s12  ;;  %p623_p13 = scmp.lt.s32.totalorder %s617_s12, %s617_s12 }
  0x1d   :  { %p624_p0 = por %p623_p13, %p622_p12 }
  0x1f   :  { %p625_p1 = pnand %p624_p0, %p618_p11 }
  0x21   :  { %628 = shalt.err (!%p625_p1)
}
  0x22   :  { %s661_s0 = smov 256   ;;  %s662_s13 = smov 16  }
  0x23   :  { %35 = dma.hbm_to_vmem [thread:$0]  %s738_s1, 16384, %s30_s30, [#allocation6], %s661_s0, %s661_s0, %s662_s13  }
  0x24   :  { %651 = dma.done.wait [#allocation3], 2048  }
  0x25   :  { %652 = vsyncadd [#allocation3], 4294965248 }
  0x26   :  { %653 = dma.done.wait [#allocation6], 16384  }
  0x27   :  { %654 = vsyncadd [#allocation6], 4294950912  ;;  %v63_v0 = vld [vmem:[#allocation5 + $0x8] sm:$0xff]  ;;  %v65_v1 = vld [vmem:[#allocation5 + $0x18] sm:$0xff] }
  0x28   :  { %v127_v2 = vld [vmem:[#allocation5 + $0x208] sm:$0xff]  ;;  %v442_v3 = vpack.c.bf16 %v65_v1, %v63_v0  ;;  %v129_v4 = vld [vmem:[#allocation5 + $0x218] sm:$0xff]  ;;  %v62_v5 = vld [vmem:[#allocation5] sm:$0xff] }
  0x29   :  { %v64_v6 = vld [vmem:[#allocation5 + $0x10] sm:$0xff]  ;;  %v506_v7 = vpack.c.bf16 %v129_v4, %v127_v2  ;;  %v126_v9 = vld [vmem:[#allocation5 + $0x200] sm:$0xff]  ;;  %v67_v11 = vld [vmem:[#allocation5 + $0x28] sm:$0xff] }
  0x2a   :  { %v444_v8 = vpack.c.bf16 %v64_v6, %v62_v5  ;;  %v128_v10 = vld [vmem:[#allocation5 + $0x210] sm:$0xff]  ;;  %443 = vmatprep.subr.bf16.mxu1 %v442_v3  ;;  %v69_v13 = vld [vmem:[#allocation5 + $0x38] sm:$0xff]  ;;  %v131_v14 = vld [vmem:[#allocation5 + $0x228] sm:$0xff] }
  0x2b   :  { %v508_v12 = vpack.c.bf16 %v128_v10, %v126_v9  ;;  %v133_v15 = vld [vmem:[#allocation5 + $0x238] sm:$0xff]  ;;  %507 = vmatprep.subr.bf16.mxu0 %v506_v7  ;;  %v446_v16 = vpack.c.bf16 %v69_v13, %v67_v11  ;;  %v66_v18 = vld [vmem:[#allocation5 + $0x20] sm:$0xff]  ;;  %v68_v19 = vld [vmem:[#allocation5 + $0x30] sm:$0xff] }
  0x2c   :  { %445 = vmatpush1.bf16.msra.mxu1 %v444_v8  ;;  %v510_v17 = vpack.c.bf16 %v133_v15, %v131_v14  ;;  %v130_v20 = vld [vmem:[#allocation5 + $0x220] sm:$0xff]  ;;  %v448_v21 = vpack.c.bf16 %v68_v19, %v66_v18  ;;  %v132_v22 = vld [vmem:[#allocation5 + $0x230] sm:$0xff]  ;;  %v71_v23 = vld [vmem:[#allocation5 + $0x48] sm:$0xff] }
  0x2d   :  { %509 = vmatpush1.bf16.msra.mxu0 %v508_v12  ;;  %v73_v24 = vld [vmem:[#allocation5 + $0x58] sm:$0xff]  ;;  %447 = vmatprep.subr.bf16.mxu1 %v446_v16  ;;  %v512_v25 = vpack.c.bf16 %v132_v22, %v130_v20  ;;  %v135_v27 = vld [vmem:[#allocation5 + $0x248] sm:$0xff]  ;;  %v70_v29 = vld [vmem:[#allocation5 + $0x40] sm:$0xff] }
  0x2e   :  { %511 = vmatprep.subr.bf16.mxu0 %v510_v17  ;;  %v450_v26 = vpack.c.bf16 %v73_v24, %v71_v23  ;;  %v137_v28 = vld [vmem:[#allocation5 + $0x258] sm:$0xff]  ;;  %v72_v31 = vld [vmem:[#allocation5 + $0x50] sm:$0xff]  ;;  %v134_v32 = vld [vmem:[#allocation5 + $0x240] sm:$0xff] }
  0x2f   :  { %v514_v30 = vpack.c.bf16 %v137_v28, %v135_v27  ;;  %v136_v33 = vld [vmem:[#allocation5 + $0x250] sm:$0xff]  ;;  %v452_v34 = vpack.c.bf16 %v72_v31, %v70_v29  ;;  %v75_v35 = vld [vmem:[#allocation5 + $0x68] sm:$0xff]  ;;  %v77_v36 = vld [vmem:[#allocation5 + $0x78] sm:$0xff] }
  0x30   :  { %449 = vmatpush1.bf16.msra.mxu1 %v448_v21  ;;  %v139_v37 = vld [vmem:[#allocation5 + $0x268] sm:$0xff]  ;;  %v516_v38 = vpack.c.bf16 %v136_v33, %v134_v32  ;;  %v454_v39 = vpack.c.bf16 %v77_v36, %v75_v35  ;;  %v141_v40 = vld [vmem:[#allocation5 + $0x278] sm:$0xff]  ;;  %v74_v41 = vld [vmem:[#allocation5 + $0x60] sm:$0xff] }
  0x31   :  { %513 = vmatpush1.bf16.msra.mxu0 %v512_v25  ;;  %451 = vmatprep.subr.bf16.mxu1 %v450_v26  ;;  %v76_v42 = vld [vmem:[#allocation5 + $0x70] sm:$0xff]  ;;  %v518_v43 = vpack.c.bf16 %v141_v40, %v139_v37  ;;  %v138_v44 = vld [vmem:[#allocation5 + $0x260] sm:$0xff]  ;;  %v79_v46 = vld [vmem:[#allocation5 + $0x88] sm:$0xff] }
  0x32   :  { %515 = vmatprep.subr.bf16.mxu0 %v514_v30  ;;  %v140_v45 = vld [vmem:[#allocation5 + $0x270] sm:$0xff]  ;;  %v81_v47 = vld [vmem:[#allocation5 + $0x98] sm:$0xff]  ;;  %v143_v48 = vld [vmem:[#allocation5 + $0x288] sm:$0xff]  ;;  %v456_v50 = vpack.c.bf16 %v76_v42, %v74_v41 }
  0x33   :  { %v145_v49 = vld [vmem:[#allocation5 + $0x298] sm:$0xff]  ;;  %v520_v51 = vpack.c.bf16 %v140_v45, %v138_v44  ;;  %v458_v52 = vpack.c.bf16 %v81_v47, %v79_v46  ;;  %v78_v53 = vld [vmem:[#allocation5 + $0x80] sm:$0xff]  ;;  %v80_v54 = vld [vmem:[#allocation5 + $0x90] sm:$0xff] }
  0x34   :  { %453 = vmatpush1.bf16.msra.mxu1 %v452_v34  ;;  %v142_v55 = vld [vmem:[#allocation5 + $0x280] sm:$0xff]  ;;  %v522_v56 = vpack.c.bf16 %v145_v49, %v143_v48  ;;  %v144_v57 = vld [vmem:[#allocation5 + $0x290] sm:$0xff]  ;;  %v83_v58 = vld [vmem:[#allocation5 + $0xa8] sm:$0xff]  ;;  %v460_v62 = vpack.c.bf16 %v80_v54, %v78_v53 }
  0x35   :  { %517 = vmatpush1.bf16.msra.mxu0 %v516_v38  ;;  %455 = vmatprep.subr.bf16.mxu1 %v454_v39  ;;  %v85_v59 = vld [vmem:[#allocation5 + $0xb8] sm:$0xff]  ;;  %v147_v60 = vld [vmem:[#allocation5 + $0x2a8] sm:$0xff]  ;;  %v524_v63 = vpack.c.bf16 %v144_v57, %v142_v55  ;;  %v82_v1 = vld [vmem:[#allocation5 + $0xa0] sm:$0xff] }
  0x36   :  { %519 = vmatprep.subr.bf16.mxu0 %v518_v43  ;;  %v149_v61 = vld [vmem:[#allocation5 + $0x2b8] sm:$0xff]  ;;  %v462_v0 = vpack.c.bf16 %v85_v59, %v83_v58  ;;  %v84_v2 = vld [vmem:[#allocation5 + $0xb0] sm:$0xff]  ;;  %v146_v3 = vld [vmem:[#allocation5 + $0x2a0] sm:$0xff] }
  0x37   :  { %v526_v4 = vpack.c.bf16 %v149_v61, %v147_v60  ;;  %v148_v5 = vld [vmem:[#allocation5 + $0x2b0] sm:$0xff]  ;;  %v87_v6 = vld [vmem:[#allocation5 + $0xc8] sm:$0xff]  ;;  %v89_v7 = vld [vmem:[#allocation5 + $0xd8] sm:$0xff]  ;;  %v464_v10 = vpack.c.bf16 %v84_v2, %v82_v1 }
  0x38   :  { %457 = vmatpush1.bf16.msra.mxu1 %v456_v50  ;;  %v151_v8 = vld [vmem:[#allocation5 + $0x2c8] sm:$0xff]  ;;  %v153_v9 = vld [vmem:[#allocation5 + $0x2d8] sm:$0xff]  ;;  %v528_v11 = vpack.c.bf16 %v148_v5, %v146_v3  ;;  %v466_v12 = vpack.c.bf16 %v89_v7, %v87_v6  ;;  %v86_v13 = vld [vmem:[#allocation5 + $0xc0] sm:$0xff] }
  0x39   :  { %521 = vmatpush1.bf16.msra.mxu0 %v520_v51  ;;  %459 = vmatprep.subr.bf16.mxu1 %v458_v52  ;;  %v88_v14 = vld [vmem:[#allocation5 + $0xd0] sm:$0xff]  ;;  %v150_v15 = vld [vmem:[#allocation5 + $0x2c0] sm:$0xff]  ;;  %v530_v16 = vpack.c.bf16 %v153_v9, %v151_v8  ;;  %v91_v18 = vld [vmem:[#allocation5 + $0xe8] sm:$0xff] }
  0x3a   :  { %523 = vmatprep.subr.bf16.mxu0 %v522_v56  ;;  %v152_v17 = vld [vmem:[#allocation5 + $0x2d0] sm:$0xff]  ;;  %v93_v19 = vld [vmem:[#allocation5 + $0xf8] sm:$0xff]  ;;  %v155_v20 = vld [vmem:[#allocation5 + $0x2e8] sm:$0xff]  ;;  %v468_v22 = vpack.c.bf16 %v88_v14, %v86_v13 }
  0x3b   :  { %v157_v21 = vld [vmem:[#allocation5 + $0x2f8] sm:$0xff]  ;;  %v532_v23 = vpack.c.bf16 %v152_v17, %v150_v15  ;;  %v470_v24 = vpack.c.bf16 %v93_v19, %v91_v18  ;;  %v90_v25 = vld [vmem:[#allocation5 + $0xe0] sm:$0xff]  ;;  %v92_v26 = vld [vmem:[#allocation5 + $0xf0] sm:$0xff] }
  0x3c   :  { %461 = vmatpush1.bf16.msra.mxu1 %v460_v62  ;;  %v154_v27 = vld [vmem:[#allocation5 + $0x2e0] sm:$0xff]  ;;  %v534_v28 = vpack.c.bf16 %v157_v21, %v155_v20  ;;  %v156_v29 = vld [vmem:[#allocation5 + $0x2f0] sm:$0xff]  ;;  %v95_v30 = vld [vmem:[#allocation5 + $0x108] sm:$0xff]  ;;  %v472_v34 = vpack.c.bf16 %v92_v26, %v90_v25 }
  0x3d   :  { %525 = vmatpush1.bf16.msra.mxu0 %v524_v63  ;;  %463 = vmatprep.subr.bf16.mxu1 %v462_v0  ;;  %v97_v31 = vld [vmem:[#allocation5 + $0x118] sm:$0xff]  ;;  %v159_v32 = vld [vmem:[#allocation5 + $0x308] sm:$0xff]  ;;  %v536_v35 = vpack.c.bf16 %v156_v29, %v154_v27  ;;  %v94_v37 = vld [vmem:[#allocation5 + $0x100] sm:$0xff] }
  0x3e   :  { %527 = vmatprep.subr.bf16.mxu0 %v526_v4  ;;  %v161_v33 = vld [vmem:[#allocation5 + $0x318] sm:$0xff]  ;;  %v474_v36 = vpack.c.bf16 %v97_v31, %v95_v30  ;;  %v96_v38 = vld [vmem:[#allocation5 + $0x110] sm:$0xff]  ;;  %v158_v39 = vld [vmem:[#allocation5 + $0x300] sm:$0xff] }
  0x3f   :  { %v538_v40 = vpack.c.bf16 %v161_v33, %v159_v32  ;;  %v160_v41 = vld [vmem:[#allocation5 + $0x310] sm:$0xff]  ;;  %v99_v42 = vld [vmem:[#allocation5 + $0x128] sm:$0xff]  ;;  %v101_v43 = vld [vmem:[#allocation5 + $0x138] sm:$0xff]  ;;  %v476_v46 = vpack.c.bf16 %v96_v38, %v94_v37 }
  0x40   :  { %465 = vmatpush1.bf16.msra.mxu1 %v464_v10  ;;  %v163_v44 = vld [vmem:[#allocation5 + $0x328] sm:$0xff]  ;;  %v165_v45 = vld [vmem:[#allocation5 + $0x338] sm:$0xff]  ;;  %v540_v47 = vpack.c.bf16 %v160_v41, %v158_v39  ;;  %v478_v48 = vpack.c.bf16 %v101_v43, %v99_v42  ;;  %v98_v49 = vld [vmem:[#allocation5 + $0x120] sm:$0xff] }
  0x41   :  { %529 = vmatpush1.bf16.msra.mxu0 %v528_v11  ;;  %467 = vmatprep.subr.bf16.mxu1 %v466_v12  ;;  %v100_v50 = vld [vmem:[#allocation5 + $0x130] sm:$0xff]  ;;  %v162_v51 = vld [vmem:[#allocation5 + $0x320] sm:$0xff]  ;;  %v542_v52 = vpack.c.bf16 %v165_v45, %v163_v44  ;;  %v103_v54 = vld [vmem:[#allocation5 + $0x148] sm:$0xff] }
  0x42   :  { %531 = vmatprep.subr.bf16.mxu0 %v530_v16  ;;  %v164_v53 = vld [vmem:[#allocation5 + $0x330] sm:$0xff]  ;;  %v105_v55 = vld [vmem:[#allocation5 + $0x158] sm:$0xff]  ;;  %v167_v56 = vld [vmem:[#allocation5 + $0x348] sm:$0xff]  ;;  %v480_v58 = vpack.c.bf16 %v100_v50, %v98_v49 }
  0x43   :  { %v169_v57 = vld [vmem:[#allocation5 + $0x358] sm:$0xff]  ;;  %v544_v59 = vpack.c.bf16 %v164_v53, %v162_v51  ;;  %v482_v60 = vpack.c.bf16 %v105_v55, %v103_v54  ;;  %v102_v61 = vld [vmem:[#allocation5 + $0x140] sm:$0xff]  ;;  %v104_v62 = vld [vmem:[#allocation5 + $0x150] sm:$0xff] }
  0x44   :  { %469 = vmatpush1.bf16.msra.mxu1 %v468_v22  ;;  %v166_v63 = vld [vmem:[#allocation5 + $0x340] sm:$0xff]  ;;  %v546_v0 = vpack.c.bf16 %v169_v57, %v167_v56  ;;  %v168_v1 = vld [vmem:[#allocation5 + $0x350] sm:$0xff]  ;;  %v107_v2 = vld [vmem:[#allocation5 + $0x168] sm:$0xff]  ;;  %v484_v6 = vpack.c.bf16 %v104_v62, %v102_v61 }
  0x45   :  { %533 = vmatpush1.bf16.msra.mxu0 %v532_v23  ;;  %471 = vmatprep.subr.bf16.mxu1 %v470_v24  ;;  %v109_v3 = vld [vmem:[#allocation5 + $0x178] sm:$0xff]  ;;  %v171_v4 = vld [vmem:[#allocation5 + $0x368] sm:$0xff]  ;;  %v106_v7 = vld [vmem:[#allocation5 + $0x160] sm:$0xff]  ;;  %v548_v8 = vpack.c.bf16 %v168_v1, %v166_v63 }
  0x46   :  { %535 = vmatprep.subr.bf16.mxu0 %v534_v28  ;;  %v173_v5 = vld [vmem:[#allocation5 + $0x378] sm:$0xff]  ;;  %v486_v9 = vpack.c.bf16 %v109_v3, %v107_v2  ;;  %v108_v10 = vld [vmem:[#allocation5 + $0x170] sm:$0xff]  ;;  %v170_v11 = vld [vmem:[#allocation5 + $0x360] sm:$0xff] }
  0x47   :  { %v172_v12 = vld [vmem:[#allocation5 + $0x370] sm:$0xff]  ;;  %v550_v13 = vpack.c.bf16 %v173_v5, %v171_v4  ;;  %v111_v14 = vld [vmem:[#allocation5 + $0x188] sm:$0xff]  ;;  %v113_v15 = vld [vmem:[#allocation5 + $0x198] sm:$0xff]  ;;  %v488_v20 = vpack.c.bf16 %v108_v10, %v106_v7 }
  0x48   :  { %473 = vmatpush1.bf16.msra.mxu1 %v472_v34  ;;  %v47_v16 = vld [vmem:[#allocation2 + $0x8] sm:$0xff]  ;;  %v177_v18 = vld [vmem:[#allocation5 + $0x398] sm:$0xff]  ;;  %v552_v21 = vpack.c.bf16 %v172_v12, %v170_v11  ;;  %v490_v22 = vpack.c.bf16 %v113_v15, %v111_v14  ;;  %v110_v23 = vld [vmem:[#allocation5 + $0x180] sm:$0xff] }
  0x49   :  { %537 = vmatpush1.bf16.msra.mxu0 %v536_v35  ;;  %475 = vmatprep.subr.bf16.mxu1 %v474_v36  ;;  %v175_v17 = vld [vmem:[#allocation5 + $0x388] sm:$0xff]  ;;  %v49_v19 = vld [vmem:[#allocation2 + $0x18] sm:$0xff]  ;;  %v112_v24 = vld [vmem:[#allocation5 + $0x190] sm:$0xff] }
  0x4a   :  { %539 = vmatprep.subr.bf16.mxu0 %v538_v40  ;;  %254 = vmatprep.mubr.f32.mxu1 %v47_v16  ;;  %v174_v25 = vld [vmem:[#allocation5 + $0x380] sm:$0xff]  ;;  %v554_v26 = vpack.c.bf16 %v177_v18, %v175_v17  ;;  %v176_v27 = vld [vmem:[#allocation5 + $0x390] sm:$0xff]  ;;  %v115_v28 = vld [vmem:[#allocation5 + $0x1a8] sm:$0xff]  ;;  %v492_v32 = vpack.c.bf16 %v112_v24, %v110_v23  ;;  %v370_v16 = vlaneseq }
  0x4b   :  { %343 = vmatprep.mubr.f32.mxu0 %v49_v19  ;;  %v117_v29 = vld [vmem:[#allocation5 + $0x1b8] sm:$0xff]  ;;  %v179_v30 = vld [vmem:[#allocation5 + $0x3a8] sm:$0xff]  ;;  %v556_v33 = vpack.c.bf16 %v176_v27, %v174_v25  ;;  %v114_v35 = vld [vmem:[#allocation5 + $0x1a0] sm:$0xff] }
  0x4c   :  { %477 = vmatpush1.bf16.msra.mxu1 %v476_v46  ;;  %v181_v31 = vld [vmem:[#allocation5 + $0x3b8] sm:$0xff]  ;;  %v494_v34 = vpack.c.bf16 %v117_v29, %v115_v28  ;;  %v116_v36 = vld [vmem:[#allocation5 + $0x1b0] sm:$0xff]  ;;  %v178_v37 = vld [vmem:[#allocation5 + $0x3a0] sm:$0xff]  ;;  %v371_v17 = vshrl.u32 %v370_v16, 7 }
  0x4d   :  { %541 = vmatpush1.bf16.msra.mxu0 %v540_v47  ;;  %479 = vmatprep.subr.bf16.mxu1 %v478_v48  ;;  %v558_v38 = vpack.c.bf16 %v181_v31, %v179_v30  ;;  %v180_v39 = vld [vmem:[#allocation5 + $0x3b0] sm:$0xff]  ;;  %v119_v40 = vld [vmem:[#allocation5 + $0x1c8] sm:$0xff]  ;;  %v121_v41 = vld [vmem:[#allocation5 + $0x1d8] sm:$0xff]  ;;  %v496_v44 = vpack.c.bf16 %v116_v36, %v114_v35 }
  0x4e   :  { %543 = vmatprep.subr.bf16.mxu0 %v542_v52  ;;  %v183_v42 = vld [vmem:[#allocation5 + $0x3c8] sm:$0xff]  ;;  %v185_v43 = vld [vmem:[#allocation5 + $0x3d8] sm:$0xff]  ;;  %v560_v45 = vpack.c.bf16 %v180_v39, %v178_v37  ;;  %v498_v46 = vpack.c.bf16 %v121_v41, %v119_v40  ;;  %v118_v47 = vld [vmem:[#allocation5 + $0x1c0] sm:$0xff]  ;;  %v372_v18 = vsub.s32 0, %v371_v17 }
  0x4f   :  { %v120_v48 = vld [vmem:[#allocation5 + $0x1d0] sm:$0xff]  ;;  %v182_v49 = vld [vmem:[#allocation5 + $0x3c0] sm:$0xff]  ;;  %v562_v50 = vpack.c.bf16 %v185_v43, %v183_v42  ;;  %v123_v52 = vld [vmem:[#allocation5 + $0x1e8] sm:$0xff] }
  0x50   :  { %481 = vmatpush1.bf16.msra.mxu1 %v480_v58  ;;  %v184_v51 = vld [vmem:[#allocation5 + $0x3d0] sm:$0xff]  ;;  %v125_v53 = vld [vmem:[#allocation5 + $0x1f8] sm:$0xff]  ;;  %v187_v54 = vld [vmem:[#allocation5 + $0x3e8] sm:$0xff]  ;;  %v500_v56 = vpack.c.bf16 %v120_v48, %v118_v47 }
  0x51   :  { %545 = vmatpush1.bf16.msra.mxu0 %v544_v59  ;;  %483 = vmatprep.subr.bf16.mxu1 %v482_v60  ;;  %v189_v55 = vld [vmem:[#allocation5 + $0x3f8] sm:$0xff]  ;;  %v564_v57 = vpack.c.bf16 %v184_v51, %v182_v49  ;;  %v502_v58 = vpack.c.bf16 %v125_v53, %v123_v52  ;;  %v122_v59 = vld [vmem:[#allocation5 + $0x1e0] sm:$0xff]  ;;  %v124_v60 = vld [vmem:[#allocation5 + $0x1f0] sm:$0xff] }
  0x52   :  { %547 = vmatprep.subr.bf16.mxu0 %v546_v0  ;;  %v566_v61 = vpack.c.bf16 %v189_v55, %v187_v54  ;;  %v186_v62 = vld [vmem:[#allocation5 + $0x3e0] sm:$0xff]  ;;  %v188_v63 = vld [vmem:[#allocation5 + $0x3f0] sm:$0xff]  ;;  %v504_v0 = vpack.c.bf16 %v124_v60, %v122_v59  ;;  %v51_v4 = vld [vmem:[#allocation2 + $0x28] sm:$0xff] }
  0x53   :  { %v568_v1 = vpack.c.bf16 %v188_v63, %v186_v62  ;;  %v46_v2 = vld [vmem:[#allocation2] sm:$0xff]  ;;  %v48_v3 = vld [vmem:[#allocation2 + $0x10] sm:$0xff]  ;;  %v53_v5 = vld [vmem:[#allocation2 + $0x38] sm:$0xff] }
  0x54   :  { %485 = vmatpush1.bf16.msra.mxu1 %v484_v6  ;;  %v50_v6 = vld [vmem:[#allocation2 + $0x20] sm:$0xff]  ;;  %v52_v7 = vld [vmem:[#allocation2 + $0x30] sm:$0xff]  ;;  %v59_v12 = vld [vmem:[#allocation2 + $0x68] sm:$0xff] }
  0x55   :  { %549 = vmatpush1.bf16.msra.mxu0 %v548_v8  ;;  %487 = vmatprep.subr.bf16.mxu1 %v486_v9  ;;  %v55_v8 = vld [vmem:[#allocation2 + $0x48] sm:$0xff]  ;;  %v57_v9 = vld [vmem:[#allocation2 + $0x58] sm:$0xff]  ;;  %v54_v10 = vld [vmem:[#allocation2 + $0x40] sm:$0xff] }
  0x56   :  { %551 = vmatprep.subr.bf16.mxu0 %v550_v13  ;;  %v56_v11 = vld [vmem:[#allocation2 + $0x50] sm:$0xff]  ;;  %v61_v13 = vld [vmem:[#allocation2 + $0x78] sm:$0xff]  ;;  %v58_v14 = vld [vmem:[#allocation2 + $0x60] sm:$0xff] }
  0x57   :  { %v60_v15 = vld [vmem:[#allocation2 + $0x70] sm:$0xff]  ;;  %v368_v19 = vld [vmem:[%s739_s2] sm:$0x3]  ;;  %s663_s2 = smov [#allocation7]  }
  0x58   :  { %489 = vmatpush1.bf16.msra.mxu1 %v488_v20  ;;  %v376_v20 = vsub.s32 1, %v371_v17  ;;  %v373_v23 = vrot.slane %v368_v19, %v372_v18 }
  0x59   :  { %553 = vmatpush1.bf16.msra.mxu0 %v552_v21  ;;  %491 = vmatprep.subr.bf16.mxu1 %v490_v22  ;;  %v388_v21 = vld [vmem:[%s740_s3] sm:$0x3]  ;;  %s429_s3 = sshll.u32 %s663_s2, 4  ;;  %s430_s3 = int_to_ptr.vmem [resolvable:$true] %s429_s3 }
  0x5a   :  { %555 = vmatprep.subr.bf16.mxu0 %v554_v26  ;;  %v377_v26 = vrot.slane %v368_v19, %v376_v20  ;;  %v393_v28 = vrot.slane %v388_v21, %v372_v18  ;;  %v397_v31 = vrot.slane %v388_v21, %v376_v20  ;;  %s629_s19 = scalar_lea.vmem %s430_s3, 1024  ;;  %p634_p3 = scmp.lt.s32.totalorder %s430_s3, %s430_s3 }
  0x5b   :  { %p630_p2 = scmp.ne.s32.totalorder %s430_s3, %s629_s19  ;;  %p635_p4 = scmp.lt.s32.totalorder %s629_s19, %s629_s19 }
  0x5c   :  { %493 = vmatpush1.bf16.msra.mxu1 %v492_v32 }
  0x5d   :  { %557 = vmatpush1.bf16.msra.mxu0 %v556_v33  ;;  %495 = vmatprep.subr.bf16.mxu1 %v494_v34  ;;  %p636_p5 = por %p635_p4, %p634_p3 }
  0x5e   :  { %559 = vmatprep.subr.bf16.mxu0 %v558_v38 }
  0x5f   :  { %p637_p6 = pnand %p636_p5, %p630_p2 }
  0x60   :  { %497 = vmatpush1.bf16.msra.mxu1 %v496_v44 }
  0x61   :  { %561 = vmatpush1.bf16.msra.mxu0 %v560_v45  ;;  %499 = vmatprep.subr.bf16.mxu1 %v498_v46 }
  0x62   :  { %563 = vmatprep.subr.bf16.mxu0 %v562_v50 }
  0x64   :  { %501 = vmatpush1.bf16.msra.mxu1 %v500_v56 }
  0x65   :  { %565 = vmatpush1.bf16.msra.mxu0 %v564_v57  ;;  %503 = vmatprep.subr.bf16.mxu1 %v502_v58 }
  0x66   :  { %567 = vmatprep.subr.bf16.mxu0 %v566_v61 }
  0x68   :  { %505 = vmatpush1.bf16.msra.mxu1 %v504_v0 }
  0x69   :  { %569 = vmatpush1.bf16.msra.mxu0 %v568_v1 }
  0x6b   :  { %255 = vmatmul.mubr.f32.vlgmr.msra.gmra.mrb[0].mxu1 %v46_v2 }
  0x6c   :  { %344 = vmatmul.mubr.f32.vlgmr.msra.gmra.mrb[0].mxu0 %v48_v3  ;;  %260 = vmatprep.mubr.f32.mxu1 %v51_v4 }
  0x6d   :  { %349 = vmatprep.mubr.f32.mxu0 %v53_v5 }
  0x6f   :  { %261 = vmatmul.mubr.f32.gmra.mrb[2].mxu1 %v50_v6 }
  0x70   :  { %350 = vmatmul.mubr.f32.gmra.mrb[2].mxu0 %v52_v7  ;;  %266 = vmatprep.mubr.f32.mxu1 %v55_v8 }
  0x71   :  { %355 = vmatprep.mubr.f32.mxu0 %v57_v9 }
  0x73   :  { %267 = vmatmul.mubr.f32.gmra.mrb[4].mxu1 %v54_v10 }
  0x74   :  { %356 = vmatmul.mubr.f32.gmra.mrb[4].mxu0 %v56_v11  ;;  %272 = vmatprep.mubr.f32.mxu1 %v59_v12 }
  0x75   :  { %361 = vmatprep.mubr.f32.mxu0 %v61_v13 }
  0x77   :  { %273 = vmatmul.mubr.f32.gmra.mrb[6].mxu1 %v58_v14 }
  0x78   :  { %362 = vmatmul.mubr.f32.gmra.mrb[6].mxu0 %v60_v15 }
 0x13e   :  { %v256_v22 = vpop.f32.mrb[0].mxu1 }
 0x13f   :  { %v345_v24 = vpop.f32.mrb[0].mxu0  ;;  %v258_v25 = vpop.f32.mrb[1].mxu1 }
 0x140   :  { %v346_v27 = vadd.f32 %v345_v24, %v256_v22  ;;  %v347_v29 = vpop.f32.mrb[1].mxu0 }
 0x141   :  { %v348_v30 = vadd.f32 %v347_v29, %v258_v25 }
 0x142   :  { %v380_v32 = vmul.f32 %v373_v23, %v346_v27  ;;  %v262_v33 = vpop.f32.mrb[2].mxu1 }
 0x143   :  { %v381_v34 = vmul.f32 %v377_v26, %v348_v30  ;;  %v351_v35 = vpop.f32.mrb[2].mxu0  ;;  %v264_v36 = vpop.f32.mrb[3].mxu1 }
 0x144   :  { %v400_v37 = vadd.f32 %v393_v28, %v380_v32  ;;  %v352_v38 = vadd.f32 %v351_v35, %v262_v33  ;;  %v353_v39 = vpop.f32.mrb[3].mxu0 }
 0x145   :  { %v401_v40 = vadd.f32 %v397_v31, %v381_v34  ;;  %v354_v41 = vadd.f32 %v353_v39, %v264_v36 }
 0x146   :  { %v408_v42 = vmax.f32 %v400_v37, 0.0  ;;  %v382_v43 = vmul.f32 %v373_v23, %v352_v38  ;;  %v268_v44 = vpop.f32.mrb[4].mxu1 }
 0x147   :  { %v409_v45 = vmax.f32 %v401_v40, 0.0  ;;  %v383_v46 = vmul.f32 %v377_v26, %v354_v41  ;;  %v357_v47 = vpop.f32.mrb[4].mxu0  ;;  %v270_v48 = vpop.f32.mrb[5].mxu1 }
 0x148   :  { %416 = vst [vmem:[#allocation7] sm:$0xff] %v408_v42  ;;  %v402_v49 = vadd.f32 %v393_v28, %v382_v43  ;;  %v358_v50 = vadd.f32 %v357_v47, %v268_v44  ;;  %v359_v51 = vpop.f32.mrb[5].mxu0 }
 0x149   :  { %417 = vst [vmem:[#allocation7 + $0x8] sm:$0xff] %v409_v45  ;;  %v403_v52 = vadd.f32 %v397_v31, %v383_v46  ;;  %v360_v53 = vadd.f32 %v359_v51, %v270_v48 }
 0x14a   :  { %v410_v54 = vmax.f32 %v402_v49, 0.0  ;;  %v384_v55 = vmul.f32 %v373_v23, %v358_v50  ;;  %v274_v56 = vpop.f32.mrb[6].mxu1 }
 0x14b   :  { %v411_v57 = vmax.f32 %v403_v52, 0.0  ;;  %v385_v58 = vmul.f32 %v377_v26, %v360_v53  ;;  %v363_v59 = vpop.f32.mrb[6].mxu0  ;;  %v276_v60 = vpop.f32.mrb[7].mxu1 }
 0x14c   :  { %418 = vst [vmem:[#allocation7 + $0x10] sm:$0xff] %v410_v54  ;;  %v404_v61 = vadd.f32 %v393_v28, %v384_v55  ;;  %v364_v62 = vadd.f32 %v363_v59, %v274_v56  ;;  %v365_v63 = vpop.f32.mrb[7].mxu0 }
 0x14d   :  { %419 = vst [vmem:[#allocation7 + $0x18] sm:$0xff] %v411_v57  ;;  %v405_v0 = vadd.f32 %v397_v31, %v385_v58  ;;  %v366_v1 = vadd.f32 %v365_v63, %v276_v60 }
 0x14e   :  { %v412_v2 = vmax.f32 %v404_v61, 0.0  ;;  %v386_v3 = vmul.f32 %v373_v23, %v364_v62 }
 0x14f   :  { %v413_v4 = vmax.f32 %v405_v0, 0.0  ;;  %v387_v5 = vmul.f32 %v377_v26, %v366_v1 }
 0x150   :  { %420 = vst [vmem:[#allocation7 + $0x20] sm:$0xff] %v412_v2  ;;  %v406_v6 = vadd.f32 %v393_v28, %v386_v3 }
 0x151   :  { %421 = vst [vmem:[#allocation7 + $0x28] sm:$0xff] %v413_v4  ;;  %v407_v7 = vadd.f32 %v397_v31, %v387_v5 }
 0x152   :  { %v414_v8 = vmax.f32 %v406_v6, 0.0 }
 0x153   :  { %v415_v9 = vmax.f32 %v407_v7, 0.0 }
 0x154   :  { %422 = vst [vmem:[#allocation7 + $0x30] sm:$0xff] %v414_v8 }
 0x155   :  { %423 = vst [vmem:[#allocation7 + $0x38] sm:$0xff] %v415_v9 }
 0x156   :  { %640 = shalt.err (!%p637_p6)
}
 0x157   :  { %s641_s22 = scalar_lea.hbm %s741_s4, 1024 }
 0x158   :  { %p642_p7 = scmp.ne.s32.totalorder %s741_s4, %s641_s22  ;;  %p645_p8 = scmp.lt.u32.totalorder %s641_s22, %s741_s4 }
 0x15a   :  { %p647_p9 = pnand %p645_p8, %p642_p7 }
 0x15c   :  { %650 = shalt.err (!%p647_p9)
}
 0x15d   :  { %435 = dma.vmem_to_hbm [thread:$0]  %s430_s3, 1024, %s741_s4, [#allocation4], %s661_s0, %s661_s0, %s662_s13  }
 0x15e   :  { %655 = dma.done.wait [#allocation4], 1024  }
 0x15f   :  { %656 = vsyncadd [#allocation4], 4294966272 }
 0x160   :  { %439 = vsyncpa [#allocation3], 1 }
 0x161   :  { %440 = vsyncpa [#allocation6], 1 }
 0x162   :  { %441 = vsyncpa [#allocation4], 1 }

</bundles_post_ra>
